<compile_context>
chip_gen: v7x
topology: tpu7x:2x2x1
jax: 0.10.0
libtpu: 0.0.40
codegen_flags: <defaults>
</compile_context>

<pallas_src>
import math

import jax
import jax.numpy as jnp
from jax.experimental import pallas as pl
from jax.experimental.pallas import tpu as pltpu


def _copy_kernel(x_ref, o_ref):
    # x_ref: (tb, th) slab of inputs[item_index][0] (leading L dim squeezed
    # away by the BlockSpec).  Pure copy -> binding resource is HBM bandwidth.
    o_ref[...] = x_ref[...]


def _pick_tile(dim, preferred, align):
    """Largest tile <= `preferred` that is a multiple of `align`, or the full
    dim if the dim itself is not a multiple of `align` (full-extent blocks are
    always legal on TPU)."""
    if dim % align != 0:
        return dim
    t = min(dim, preferred)
    return max(align, (t // align) * align)


def select_item(inputs, item_index, *, force_pallas=False, min_bytes=1 << 20):
    """Pallas implementation of SelectItem(item_index).forward(inputs).

    `inputs` is a tuple/list of arrays; `item_index` is a static Python int.
    Returns inputs[item_index][0] (slice along the leading axis).
    """
    x = inputs[item_index]
    assert x.ndim >= 2, "expected at least a 2D tensor to slice along axis 0"

    out_bytes = math.prod(x.shape[1:]) * x.dtype.itemsize

    # Fast path: tiny slabs (or unusual ranks) are cheaper as a plain XLA
    # slice than as a pallas_call with fixed launch + DMA round-trip overhead.
    if x.ndim != 3 or (not force_pallas and out_bytes < min_bytes):
        return x[0]

    _, B, H = x.shape

    # Big, lane-dense tiles: H tile is a multiple of 128 (unmasked vst),
    # B tile a multiple of 8 (sublane aligned); cap so 2x double-buffered
    # blocks stay well under scoped VMEM on every generation (<= ~4 MiB/block
    # at f32).
    tb = _pick_tile(B, 512, 8)
    th = _pick_tile(H, 1024, 128)
    grid = (pl.cdiv(B, tb), pl.cdiv(H, th))

    return pl.pallas_call(
        _copy_kernel,
        out_shape=jax.ShapeDtypeStruct((B, H), x.dtype),
        grid=grid,
        in_specs=[
            # Only the [0] slab along the leading axis is ever copied to VMEM.
            pl.BlockSpec((pl.Squeezed(), tb, th), lambda i, j: (0, i, j)),
        ],
        out_specs=pl.BlockSpec((tb, th), lambda i, j: (i, j)),
        compiler_params=pltpu.CompilerParams(
            dimension_semantics=("parallel", "parallel")
        ),
    )(x)


if __name__ == "__main__":
    key = jax.random.PRNGKey(0)
    k_out, k_h, k_odd = jax.random.split(key, 3)

    # Small LSTM-like shapes: seq=8, batch=8, hidden=128, num_layers*dirs=2.
    # hidden=128 keeps the output lane-dense (multiple of 128).
    seq, batch, hidden, layers = 8, 8, 128, 2

    # inputs[0]: per-timestep output tensor (seq, batch, hidden)
    # inputs[1]: stacked hidden states (layers, batch, hidden)  (h_n-like)
    output = jax.random.normal(k_out, (seq, batch, hidden), dtype=jnp.float32)
    h_stack = jax.random.normal(k_h, (layers, batch, hidden), dtype=jnp.float32)
    inputs = (output, h_stack)

    ok = True

    # Exercise the Pallas kernel on both tuple members (forced so the demo's
    # small tensors still go through the kernel rather than the XLA fast path).
    for item_index in (0, 1):
        got = jax.block_until_ready(
            select_item(inputs, item_index, force_pallas=True)
        )
        ref = inputs[item_index][0]
        ok &= got.shape == ref.shape and got.dtype == ref.dtype
        ok &= bool(jnp.array_equal(got, ref))

    # Non-aligned shape (full-extent blocks path): batch=5, hidden=40.
    odd = jax.random.normal(k_odd, (3, 5, 40), dtype=jnp.float32)
    got_odd = jax.block_until_ready(select_item((odd,), 0, force_pallas=True))
    ok &= bool(jnp.array_equal(got_odd, odd[0]))

    # Auto path (tiny tensor -> plain XLA slice, no Pallas launch).
    got_auto = jax.block_until_ready(select_item(inputs, 1))
    ok &= bool(jnp.array_equal(got_auto, inputs[1][0]))

    assert ok, "Pallas SelectItem result mismatch"
    print("KERNEL_OK")
</pallas_src>

<mosaic_0001>
module attributes {stable_mosaic.version = 11 : i64} {
  func.func @_copy_kernel(%arg0: i32, %arg1: i32, %arg2: memref<1x8x128xf32, #tpu.memory_space<vmem>>, %arg3: memref<8x128xf32, #tpu.memory_space<vmem>>) attributes {dimension_semantics = [#tpu.dimension_semantics<parallel>, #tpu.dimension_semantics<parallel>], iteration_bounds = array<i64: 1, 1>, scalar_prefetch = 0 : i64, scratch_operands = 0 : i64, tpu.core_type = #tpu.core_type<tc>, window_params = [{transform_indices = @transform_0, window_bounds = array<i64: 1, 8, 128>}, {transform_indices = @transform_1, window_bounds = array<i64: 8, 128>}]} {
    %c0 = arith.constant 0 : index
    %c0_0 = arith.constant 0 : index
    %c0_1 = arith.constant 0 : index
    %0 = vector.load %arg2[%c0, %c0_0, %c0_1] : memref<1x8x128xf32, #tpu.memory_space<vmem>>, vector<1x8x128xf32>
    %1 = vector.shape_cast %0 : vector<1x8x128xf32> to vector<8x128xf32>
    %c0_2 = arith.constant 0 : index
    %c0_3 = arith.constant 0 : index
    %2 = vector.load %arg3[%c0_2, %c0_3] : memref<8x128xf32, #tpu.memory_space<vmem>>, vector<8x128xf32>
    tpu.vector_store %arg3[%c0_2, %c0_3], %1 {strides = array<i32>} : memref<8x128xf32, #tpu.memory_space<vmem>>, vector<8x128xf32>,
    return
  }
  func.func @transform_0(%arg0: i32, %arg1: i32) -> (i32, i32, i32) {
    %c0_i32 = arith.constant 0 : i32
    %c0_i32_0 = arith.constant 0 : i32
    return %c0_i32, %arg0, %arg1 : i32, i32, i32
  }
  func.func @transform_1(%arg0: i32, %arg1: i32) -> (i32, i32) {
    %c0_i32 = arith.constant 0 : i32
    return %arg0, %arg1 : i32, i32
  }
}

</mosaic_0001>

<bundles_post_ra>
// kernel: tpu_custom_call.1
= control target key start
LH: loop header
LB: loop body
LE: loop exit
PB: predicated region body
PF: predicated region fallthrough
CT: control target
= control target key end

     0   :  { %6 = vsyncpa [#allocation3], 0  ;;  %s127_s0 = inlined_call_operand.hbm [shape: f32[8,8,128], index: 0, kind: input, shape index: {}]   ;;  %s128_s1 = inlined_call_operand.hbm [shape: f32[8,128], index: 1, kind: output, shape index: {}]  }
   0x1   :  { %7 = vsyncpa [#allocation4], 0  ;;  %s88_s6 = smov [#allocation2]   ;;  %s40_s10 = scalar_lea.hbm %s127_s0, 128 }
   0x2   :  { %s14_s7 = sshll.u32 %s88_s6, 4  ;;  %p41_p0 = scmp.ne.s32.totalorder %s127_s0, %s40_s10  ;;  %s15_s7 = int_to_ptr.vmem [resolvable:$true] %s14_s7 }
   0x3   :  { %s42_s15 = scalar_lea.hbm %s127_s0, 1024  ;;  %p44_p2 = scmp.lt.u32.totalorder %s40_s10, %s127_s0 }
   0x4   :  { %p43_p1 = scmp.lt.u32.totalorder %s42_s15, %s40_s10 }
   0x6   :  { %p45_p3 = por %p44_p2, %p43_p1 }
   0x8   :  { %p46_p4 = pnand %p45_p3, %p41_p0 }
   0xa   :  { %49 = shalt.err (!%p46_p4)
}
   0xb   :  { %s50_s18 = scalar_lea.vmem %s15_s7, 128  ;;  %p55_p6 = scmp.lt.s32.totalorder %s15_s7, %s15_s7 }
   0xc   :  { %p51_p5 = scmp.ne.s32.totalorder %s15_s7, %s50_s18  ;;  %p56_p7 = scmp.lt.s32.totalorder %s50_s18, %s50_s18 }
   0xe   :  { %p57_p8 = por %p56_p7, %p55_p6 }
  0x10   :  { %p58_p9 = pnand %p57_p8, %p51_p5 }
  0x12   :  { %61 = shalt.err (!%p58_p9)
}
  0x13   :  { %17 = dma.hbm_to_vmem [thread:$0]  %s127_s0, 128, %s15_s7, [#allocation3]  }
  0x14   :  { %84 = dma.done.wait [#allocation3], 128  }
  0x15   :  { %85 = vsyncadd [#allocation3], 4294967168  ;;  %s89_s21 = smov [#allocation5]   ;;  %v21_v0 = vld [vmem:[#allocation2] sm:$0xff] }
  0x16   :  { %s29_s22 = sshll.u32 %s89_s21, 4  ;;  %22 = vst [vmem:[#allocation5] sm:$0xff] %v21_v0  ;;  %s30_s22 = int_to_ptr.vmem [resolvable:$true] %s29_s22 }
  0x17   :  { %s62_s23 = scalar_lea.vmem %s30_s22, 128  ;;  %p67_p11 = scmp.lt.s32.totalorder %s30_s22, %s30_s22 }
  0x18   :  { %p63_p10 = scmp.ne.s32.totalorder %s30_s22, %s62_s23  ;;  %p68_p12 = scmp.lt.s32.totalorder %s62_s23, %s62_s23 }
  0x1a   :  { %p69_p13 = por %p68_p12, %p67_p11 }
  0x1c   :  { %p70_p0 = pnand %p69_p13, %p63_p10 }
  0x1e   :  { %73 = shalt.err (!%p70_p0)
}
  0x1f   :  { %s74_s26 = scalar_lea.hbm %s128_s1, 128 }
  0x20   :  { %p75_p1 = scmp.ne.s32.totalorder %s128_s1, %s74_s26  ;;  %p78_p2 = scmp.lt.u32.totalorder %s74_s26, %s128_s1 }
  0x22   :  { %p80_p3 = pnand %p78_p2, %p75_p1 }
  0x24   :  { %83 = shalt.err (!%p80_p3)
}
  0x25   :  { %32 = dma.vmem_to_hbm [thread:$0]  %s30_s22, 128, %s128_s1, [#allocation4]  }
  0x26   :  { %86 = dma.done.wait [#allocation4], 128  }
  0x27   :  { %87 = vsyncadd [#allocation4], 4294967168 }
  0x28   :  { %36 = vsyncpa [#allocation3], 1 }
  0x29   :  { %37 = vsyncpa [#allocation4], 1 }

</bundles_post_ra>
